<compile_context>
chip_gen: v7x
topology: tpu7x:2x2x1
jax: 0.10.0
libtpu: 0.0.40
codegen_flags: <defaults>
</compile_context>

<pallas_src>
import jax
import jax.numpy as jnp
from jax.experimental import pallas as pl
from jax.experimental.pallas import tpu as pltpu


def _round_up(n, m):
    return ((n + m - 1) // m) * m


def mlp_kernel(xt_ref, w1t_ref, b1_ref, w2t_ref, b2_ref, w3_ref, b3_ref, o_ref):
    """Feature-major fused MLP: consumes a (in, tb) slab of xᵀ, emits a (1, tb) row."""
    # Layer 1: h1ᵀ = w1ᵀ @ xᵀ -> (hidden, tb). bf16 MXU operands, f32 accumulate.
    h1 = jnp.dot(w1t_ref[...], xt_ref[...], preferred_element_type=jnp.float32)
    h1 = jnp.maximum(h1 + b1_ref[...], 0.0)          # bias lane-broadcast; f32 VPU (v5e-safe)
    # Layer 2: h2ᵀ = w2ᵀ @ h1ᵀ -> (hidden, tb).
    h2 = jnp.dot(w2t_ref[...], h1.astype(w2t_ref.dtype),
                 preferred_element_type=jnp.float32)
    h2 = jnp.maximum(h2 + b2_ref[...], 0.0)
    # Head (out_features == 1): VPU multiply + XLU cross-sublane reduce in f32.
    # Produces a lane-dense (1, tb) row; no lane-sparse (tb, 1) intermediate.
    out = jnp.sum(h2 * w3_ref[...], axis=0, keepdims=True) + b3_ref[...]
    o_ref[...] = out.astype(o_ref.dtype)


def _pick_batch_tile(batch, block_b):
    """Batch tile (lane dim of every block). Multiple of 128 except tiny batches."""
    if batch <= 128:
        return batch                       # single full-array block: always a legal shape
    full = _round_up(batch, 128)
    tb = min(_round_up(block_b, 128), full)
    # v7x has 2 TensorCores; the "parallel" grid axis shards steps across them.
    # Keep >= ~8 steps when the batch is large enough that splitting does not
    # shrink the tile below ~1024 rows (step overhead stays amortized).
    if pl.cdiv(batch, tb) < 8:
        alt = max(1024, _round_up(pl.cdiv(batch, 8), 128))
        if alt < tb:
            tb = alt
    return tb


def simple_model_forward(x, params, *, block_b=2048, compute_dtype=jnp.bfloat16):
    """Fused 3-layer MLP forward pass.

    x:      (B, input_size) float32
    params: dict of w1 (in,h), b1 (1,h), w2 (h,h), b2 (1,h), w3 (h,1), b3 (1,1)
    returns (B, 1) float32
    """
    B, in_size = x.shape
    hidden = params["w1"].shape[1]

    # Feature-major operands. The single wrapper transpose of x is fused with the
    # bf16 cast (one HBM pass); weights/biases are tiny (~12 KiB total).
    x_t = x.T.astype(compute_dtype)                               # (in, B)
    w1_t = params["w1"].T.astype(compute_dtype)                   # (hidden, in)
    w2_t = params["w2"].T.astype(compute_dtype)                   # (hidden, hidden)
    b1_c = params["b1"].reshape(hidden, 1).astype(jnp.float32)    # (hidden, 1)
    b2_c = params["b2"].reshape(hidden, 1).astype(jnp.float32)    # (hidden, 1)
    w3_c = params["w3"].reshape(hidden, 1).astype(jnp.float32)    # (hidden, 1)
    b3_c = params["b3"].reshape(1, 1).astype(jnp.float32)         # (1, 1)

    tb = _pick_batch_tile(B, block_b)
    grid = (pl.cdiv(B, tb),)        # masked edge block handles B % tb != 0 (no padding)

    # Whole-array blocks with constant index_map -> VMEM-resident, never re-DMA'd.
    resident = lambda a: pl.BlockSpec(a.shape, lambda i: (0, 0))

    flops = 2 * B * (in_size * hidden + hidden * hidden + hidden)
    bytes_accessed = (
        x_t.size * x_t.dtype.itemsize            # dominant x stream (bf16)
        + B * 4                                  # (1, B) f32 output
        + w1_t.size * w1_t.dtype.itemsize + w2_t.size * w2_t.dtype.itemsize
        + (b1_c.size + b2_c.size + w3_c.size + b3_c.size) * 4
    )

    out_row = pl.pallas_call(
        mlp_kernel,
        out_shape=jax.ShapeDtypeStruct((1, B), jnp.float32),
        grid=grid,
        in_specs=[
            pl.BlockSpec((in_size, tb), lambda i: (0, i)),   # xᵀ: tiled over batch lanes
            resident(w1_t), resident(b1_c),
            resident(w2_t), resident(b2_c),
            resident(w3_c), resident(b3_c),
        ],
        out_specs=pl.BlockSpec((1, tb), lambda i: (0, i)),   # lane-dense (1, tb) row
        compiler_params=pltpu.CompilerParams(
            dimension_semantics=("parallel",),               # megacore on v7x
            vmem_limit_bytes=32 * 1024 * 1024,               # tiny tiles; safe on v7x 64 MiB
        ),
        cost_estimate=pl.CostEstimate(
            flops=flops, transcendentals=0, bytes_accessed=bytes_accessed),
    )(x_t, w1_t, b1_c, w2_t, b2_c, w3_c, b3_c)

    # (1, B) -> (B, 1): layout-preserving reshape (no slice, no extra HBM pass).
    return out_row.reshape(B, 1)


def init_params(key, input_size, hidden_size=64):
    """Deterministic init mimicking PyTorch's default Linear init
    (uniform(-1/sqrt(fan_in), 1/sqrt(fan_in)))."""
    ks = jax.random.split(key, 6)

    def lin(kw, kb, fan_in, fan_out):
        bound = 1.0 / jnp.sqrt(fan_in)
        w = jax.random.uniform(kw, (fan_in, fan_out), jnp.float32, -bound, bound)
        b = jax.random.uniform(kb, (1, fan_out), jnp.float32, -bound, bound)
        return w, b

    w1, b1 = lin(ks[0], ks[1], input_size, hidden_size)
    w2, b2 = lin(ks[2], ks[3], hidden_size, hidden_size)
    w3, b3 = lin(ks[4], ks[5], hidden_size, 1)
    return {"w1": w1, "b1": b1, "w2": w2, "b2": b2, "w3": w3, "b3": b3}


def reference_forward(x, p):
    h1 = jnp.maximum(x @ p["w1"] + p["b1"], 0.0)
    h2 = jnp.maximum(h1 @ p["w2"] + p["b2"], 0.0)
    return h2 @ p["w3"] + p["b3"]


if __name__ == "__main__":
    key = jax.random.PRNGKey(0)
    k_p, k_x1, k_x2 = jax.random.split(key, 3)

    input_size, hidden_size = 32, 64
    params = init_params(k_p, input_size, hidden_size)

    # Small demo shape (B <= 128 -> single full-array block).
    x_small = jax.random.normal(k_x1, (8, input_size), jnp.float32)
    out_small = jax.block_until_ready(simple_model_forward(x_small, params))
    ref_small = reference_forward(x_small, params)
    assert out_small.shape == (8, 1)
    # bf16 MXU operands -> loosened tolerance vs the f32 reference.
    assert jnp.allclose(out_small, ref_small, atol=5e-2, rtol=5e-2), "mismatch (small)"

    # Multi-step grid + masked partial edge block (B=300, tb=128 -> 3 steps).
    x_big = jax.random.normal(k_x2, (300, input_size), jnp.float32)
    out_big = jax.block_until_ready(
        simple_model_forward(x_big, params, block_b=128))
    ref_big = reference_forward(x_big, params)
    assert out_big.shape == (300, 1)
    assert jnp.allclose(out_big, ref_big, atol=5e-2, rtol=5e-2), "mismatch (tiled)"

    print("KERNEL_OK")
</pallas_src>

<mosaic_0001>
module attributes {stable_mosaic.version = 11 : i64} {
  func.func @mlp_kernel(%arg0: i32, %arg1: memref<32x8xbf16, #tpu.memory_space<vmem>>, %arg2: memref<64x32xbf16, #tpu.memory_space<vmem>>, %arg3: memref<64x1xf32, #tpu.memory_space<vmem>>, %arg4: memref<64x64xbf16, #tpu.memory_space<vmem>>, %arg5: memref<64x1xf32, #tpu.memory_space<vmem>>, %arg6: memref<64x1xf32, #tpu.memory_space<vmem>>, %arg7: memref<1x1xf32, #tpu.memory_space<vmem>>, %arg8: memref<1x8xf32, #tpu.memory_space<vmem>>) attributes {dimension_semantics = [#tpu.dimension_semantics<parallel>], iteration_bounds = array<i64: 1>, scalar_prefetch = 0 : i64, scratch_operands = 0 : i64, tpu.core_type = #tpu.core_type<tc>, window_params = [{transform_indices = @transform_0, window_bounds = array<i64: 32, 8>}, {pipeline_mode = #tpu.pipeline_mode<synchronous>, transform_indices = @transform_1, window_bounds = array<i64: 64, 32>}, {pipeline_mode = #tpu.pipeline_mode<synchronous>, transform_indices = @transform_2, window_bounds = array<i64: 64, 1>}, {pipeline_mode = #tpu.pipeline_mode<synchronous>, transform_indices = @transform_3, window_bounds = array<i64: 64, 64>}, {pipeline_mode = #tpu.pipeline_mode<synchronous>, transform_indices = @transform_4, window_bounds = array<i64: 64, 1>}, {pipeline_mode = #tpu.pipeline_mode<synchronous>, transform_indices = @transform_5, window_bounds = array<i64: 64, 1>}, {pipeline_mode = #tpu.pipeline_mode<synchronous>, transform_indices = @transform_6, window_bounds = array<i64: 1, 1>}, {transform_indices = @transform_7, window_bounds = array<i64: 1, 8>}]} {
    %c0 = arith.constant 0 : index
    %c0_0 = arith.constant 0 : index
    %0 = vector.load %arg2[%c0, %c0_0] : memref<64x32xbf16, #tpu.memory_space<vmem>>, vector<64x32xbf16>
    %c0_1 = arith.constant 0 : index
    %c0_2 = arith.constant 0 : index
    %1 = vector.load %arg1[%c0_1, %c0_2] : memref<32x8xbf16, #tpu.memory_space<vmem>>, vector<32x8xbf16>
    %cst = arith.constant dense<0.000000e+00> : vector<64x8xf32>
    %2 = tpu.matmul %0, %1, %cst {dimension_numbers = #tpu.dot_dimension_numbers<[1], [0], [0], [1], [0, 0, 1, 1], [], []>} : vector<64x32xbf16>, vector<32x8xbf16>, vector<64x8xf32> -> vector<64x8xf32>
    %c0_3 = arith.constant 0 : index
    %c0_4 = arith.constant 0 : index
    %3 = vector.load %arg3[%c0_3, %c0_4] : memref<64x1xf32, #tpu.memory_space<vmem>>, vector<64x1xf32>
    %4 = vector.broadcast %3 : vector<64x1xf32> to vector<64x8xf32>
    %5 = arith.addf %2, %4 : vector<64x8xf32>
    %cst_5 = arith.constant 0.000000e+00 : f32
    %6 = vector.broadcast %cst_5 : f32 to vector<64x8xf32>
    %7 = arith.maximumf %5, %6 : vector<64x8xf32>
    %c0_6 = arith.constant 0 : index
    %c0_7 = arith.constant 0 : index
    %8 = vector.load %arg4[%c0_6, %c0_7] : memref<64x64xbf16, #tpu.memory_space<vmem>>, vector<64x64xbf16>
    %9 = arith.truncf %7 : vector<64x8xf32> to vector<64x8xbf16>
    %cst_8 = arith.constant dense<0.000000e+00> : vector<64x8xf32>
    %10 = tpu.matmul %8, %9, %cst_8 {dimension_numbers = #tpu.dot_dimension_numbers<[1], [0], [0], [1], [0, 0, 1, 1], [], []>} : vector<64x64xbf16>, vector<64x8xbf16>, vector<64x8xf32> -> vector<64x8xf32>
    %c0_9 = arith.constant 0 : index
    %c0_10 = arith.constant 0 : index
    %11 = vector.load %arg5[%c0_9, %c0_10] : memref<64x1xf32, #tpu.memory_space<vmem>>, vector<64x1xf32>
    %12 = vector.broadcast %11 : vector<64x1xf32> to vector<64x8xf32>
    %13 = arith.addf %10, %12 : vector<64x8xf32>
    %cst_11 = arith.constant 0.000000e+00 : f32
    %14 = vector.broadcast %cst_11 : f32 to vector<64x8xf32>
    %15 = arith.maximumf %13, %14 : vector<64x8xf32>
    %c0_12 = arith.constant 0 : index
    %c0_13 = arith.constant 0 : index
    %16 = vector.load %arg6[%c0_12, %c0_13] : memref<64x1xf32, #tpu.memory_space<vmem>>, vector<64x1xf32>
    %17 = vector.broadcast %16 : vector<64x1xf32> to vector<64x8xf32>
    %18 = arith.mulf %15, %17 : vector<64x8xf32>
    %cst_14 = arith.constant dense<0.000000e+00> : vector<8xf32>
    %19 = vector.multi_reduction <add>, %18, %cst_14 [0] : vector<64x8xf32> to vector<8xf32>
    %20 = vector.shape_cast %19 : vector<8xf32> to vector<1x8xf32>
    %c0_15 = arith.constant 0 : index
    %c0_16 = arith.constant 0 : index
    %21 = vector.load %arg7[%c0_15, %c0_16] : memref<1x1xf32, #tpu.memory_space<vmem>>, vector<1x1xf32>
    %22 = vector.broadcast %21 : vector<1x1xf32> to vector<1x8xf32>
    %23 = arith.addf %20, %22 : vector<1x8xf32>
    %c0_17 = arith.constant 0 : index
    %c0_18 = arith.constant 0 : index
    %24 = vector.load %arg8[%c0_17, %c0_18] : memref<1x8xf32, #tpu.memory_space<vmem>>, vector<1x8xf32>
    tpu.vector_store %arg8[%c0_17, %c0_18], %23 {strides = array<i32>} : memref<1x8xf32, #tpu.memory_space<vmem>>, vector<1x8xf32>,
    return
  }
  func.func @transform_0(%arg0: i32) -> (i32, i32) {
    %c0_i32 = arith.constant 0 : i32
    %c0_i32_0 = arith.constant 0 : i32
    return %c0_i32, %arg0 : i32, i32
  }
  func.func @transform_1(%arg0: i32) -> (i32, i32) {
    %c0_i32 = arith.constant 0 : i32
    %c0_i32_0 = arith.constant 0 : i32
    %c0_i32_1 = arith.constant 0 : i32
    return %c0_i32, %c0_i32_0 : i32, i32
  }
  func.func @transform_2(%arg0: i32) -> (i32, i32) {
    %c0_i32 = arith.constant 0 : i32
    %c0_i32_0 = arith.constant 0 : i32
    %c0_i32_1 = arith.constant 0 : i32
    return %c0_i32, %c0_i32_0 : i32, i32
  }
  func.func @transform_3(%arg0: i32) -> (i32, i32) {
    %c0_i32 = arith.constant 0 : i32
    %c0_i32_0 = arith.constant 0 : i32
    %c0_i32_1 = arith.constant 0 : i32
    return %c0_i32, %c0_i32_0 : i32, i32
  }
  func.func @transform_4(%arg0: i32) -> (i32, i32) {
    %c0_i32 = arith.constant 0 : i32
    %c0_i32_0 = arith.constant 0 : i32
    %c0_i32_1 = arith.constant 0 : i32
    return %c0_i32, %c0_i32_0 : i32, i32
  }
  func.func @transform_5(%arg0: i32) -> (i32, i32) {
    %c0_i32 = arith.constant 0 : i32
    %c0_i32_0 = arith.constant 0 : i32
    %c0_i32_1 = arith.constant 0 : i32
    return %c0_i32, %c0_i32_0 : i32, i32
  }
  func.func @transform_6(%arg0: i32) -> (i32, i32) {
    %c0_i32 = arith.constant 0 : i32
    %c0_i32_0 = arith.constant 0 : i32
    %c0_i32_1 = arith.constant 0 : i32
    return %c0_i32, %c0_i32_0 : i32, i32
  }
  func.func @transform_7(%arg0: i32) -> (i32, i32) {
    %c0_i32 = arith.constant 0 : i32
    %c0_i32_0 = arith.constant 0 : i32
    return %c0_i32, %arg0 : i32, i32
  }
}

</mosaic_0001>

<bundles_post_ra>
// kernel: tpu_custom_call.1
= control target key start
LH: loop header
LB: loop body
LE: loop exit
PB: predicated region body
PF: predicated region fallthrough
CT: control target
= control target key end

     0   :  { %s752_s0 = inlined_call_operand.vmem [shape: bf16[32,8], index: 0, kind: input, shape index: {}]   ;;  %s753_s1 = inlined_call_operand.vmem [shape: bf16[64,32], index: 1, kind: input, shape index: {}]   ;;  %s754_s2 = inlined_call_operand.vmem [shape: f32[64,1], index: 2, kind: input, shape index: {}]   ;;  %s755_s3 = inlined_call_operand.vmem [shape: bf16[64,64], index: 3, kind: input, shape index: {}]   ;;  %s756_s4 = inlined_call_operand.vmem [shape: f32[64,1], index: 4, kind: input, shape index: {}]   ;;  %s757_s5 = inlined_call_operand.vmem [shape: f32[64,1], index: 5, kind: input, shape index: {}]   ;;  %s758_s6 = inlined_call_operand.<no memory space> [shape: f32[1,1], index: 6, kind: input, shape index: {}]   ;;  %s759_s7 = inlined_call_operand.hbm [shape: f32[1,8], index: 7, kind: output, shape index: {}]  }
   0x1   :  { %v12_v0 = vstv %s758_s6 }
   0x2   :  { %13 = vst [vmem:[#allocation2] sm:$0x1] %v12_v0 }
   0x3   :  { %v543_v1 = vld [vmem:[%s752_s0] sm:$0xff]   ;;  %vm122_vm0 = vcmask 261120   ;;  %v544_v2 = vld [vmem:[%s752_s0 + $0x8] sm:$0xff]   ;;  %v577_v4 = vmov 0   ;;  %v44_v7 = vld [vmem:[%s754_s2 + $0x10] sm:$0xff] }
   0x4   :  { %511 = vmatprep.subr.bf16.mxu0 %v543_v1  ;;  %v545_v3 = vld [vmem:[%s753_s1] sm:$0xff]   ;;  %541 = vset.pattern.permute.xlu0 %v577_v4  ;;  %v546_v5 = vld [vmem:[%s753_s1 + $0x8] sm:$0xff]   ;;  %v547_v8 = vld [vmem:[%s753_s1 + $0x10] sm:$0xff]  }
   0x5   :  { %512 = vmatpush3.bf16.msra.mxu0 %v543_v1  ;;  %542 = vset.pattern.permute.xlu1 %v577_v4  ;;  %v42_v6 = vld [vmem:[%s754_s2] sm:$0xff]  ;;  %v43_v9 = vld [vmem:[%s754_s2 + $0x8] sm:$0xff]  ;;  %v45_v10 = vld [vmem:[%s754_s2 + $0x18] sm:$0xff] }
   0x6   :  { %513 = vmatprep.subr.bf16.mxu0 %v544_v2  ;;  %515 = vmatprep.mubr.msk.bf16.mxu0 %vm122_vm0, %v545_v3  ;;  %v46_v11 = vld [vmem:[%s754_s2 + $0x20] sm:$0xff]  ;;  %v548_v12 = vld [vmem:[%s753_s1 + $0x18] sm:$0xff]   ;;  %v47_v13 = vld [vmem:[%s754_s2 + $0x28] sm:$0xff] }
   0x7   :  { %52 = vperm.xlu0 %541, %v42_v6   ;;  %62 = vperm.xlu1 %542, %v44_v7   ;;  %v48_v14 = vld [vmem:[%s754_s2 + $0x30] sm:$0xff]  ;;  %v49_v15 = vld [vmem:[%s754_s2 + $0x38] sm:$0xff] }
   0x9   :  { %514 = vmatpush3.bf16.msra.mxu0 %v544_v2 }
   0xb   :  { %57 = vperm.xlu0 %541, %v43_v9   ;;  %67 = vperm.xlu1 %542, %v45_v10  }
   0xc   :  { %516 = vmatmul.mubr.msk.bf16.vlgmr.msra.gmra.mrb[0].mxu0 %vm122_vm0, %v546_v5 }
   0xd   :  { %519 = vmatprep.mubr.msk.bf16.mxu0 %vm122_vm0, %v547_v8 }
   0xf   :  { %72 = vperm.xlu0 %541, %v46_v11   ;;  %77 = vperm.xlu1 %542, %v47_v13  }
  0x10   :  { %14 = vsyncpa [#allocation4], 0  ;;  %v220_v16 = vld [vmem:[%s756_s4] sm:$0xff]  ;;  %v221_v17 = vld [vmem:[%s756_s4 + $0x8] sm:$0xff]  ;;  %vm288_vm1 = vcmask 523264   ;;  %vm430_vm2 = vcmask 64512  }
  0x11   :  { %v222_v18 = vld [vmem:[%s756_s4 + $0x10] sm:$0xff]  ;;  %v223_v19 = vld [vmem:[%s756_s4 + $0x18] sm:$0xff]  ;;  %v374_v20 = vld [vmem:[%s757_s5] sm:$0xff]  ;;  %vm463_vm3 = vcmask 57344  }
  0x12   :  { %v375_v21 = vld [vmem:[%s757_s5 + $0x8] sm:$0xff]  ;;  %v224_v22 = vld [vmem:[%s756_s4 + $0x20] sm:$0xff]  ;;  %v376_v23 = vld [vmem:[%s757_s5 + $0x10] sm:$0xff] }
  0x13   :  { %82 = vperm.xlu0 %541, %v48_v14   ;;  %87 = vperm.xlu1 %542, %v49_v15   ;;  %v225_v24 = vld [vmem:[%s756_s4 + $0x28] sm:$0xff]  ;;  %v377_v25 = vld [vmem:[%s757_s5 + $0x18] sm:$0xff]  ;;  %v226_v26 = vld [vmem:[%s756_s4 + $0x30] sm:$0xff] }
  0x14   :  { %520 = vmatmul.mubr.msk.bf16.gmra.mrb[4].mxu0 %vm122_vm0, %v548_v12  ;;  %v378_v27 = vld [vmem:[%s757_s5 + $0x20] sm:$0xff]  ;;  %v227_v28 = vld [vmem:[%s756_s4 + $0x38] sm:$0xff]  ;;  %v379_v29 = vld [vmem:[%s757_s5 + $0x28] sm:$0xff] }
  0x15   :  { %v380_v30 = vld [vmem:[%s757_s5 + $0x30] sm:$0xff]  ;;  %v381_v31 = vld [vmem:[%s757_s5 + $0x38] sm:$0xff]  ;;  %v452_v32 = vld [vmem:[#allocation2] sm:$0x1] }
  0x16   :  { %v549_v33 = vld [vmem:[%s755_s3] sm:$0xff]   ;;  %v550_v6 = vld [vmem:[%s755_s3 + $0x8] sm:$0xff]   ;;  %v551_v7 = vld [vmem:[%s755_s3 + $0x10] sm:$0xff]  }
  0x17   :  { %230 = vperm.xlu0 %541, %v220_v16   ;;  %235 = vperm.xlu1 %542, %v221_v17   ;;  %v552_v8 = vld [vmem:[%s755_s3 + $0x18] sm:$0xff]   ;;  %s578_s3 = smov [#allocation3]  }
  0x18   :  { %531 = vmatprep.mubr.msk.bf16.mxu1 %vm288_vm1, %v549_v33  ;;  %s471_s13 = sshll.u32 %s578_s3, 4  ;;  %s472_s13 = int_to_ptr.vmem [resolvable:$true] %s471_s13 }
  0x19   :  { %s553_s14 = scalar_lea.vmem %s472_s13, 16  ;;  %s557_s15 = scalar_lea.vmem %s472_s13, 32 }
  0x1a   :  { %p554_p0 = scmp.ne.s32.totalorder %s472_s13, %s553_s14  ;;  %p558_p1 = scmp.lt.s32.totalorder %s472_s13, %s472_s13 }
  0x1b   :  { %240 = vperm.xlu0 %541, %v222_v18   ;;  %245 = vperm.xlu1 %542, %v223_v19   ;;  %p559_p2 = scmp.lt.s32.totalorder %s557_s15, %s553_s14 }
  0x1d   :  { %p560_p3 = por %p559_p2, %p558_p1 }
  0x1f   :  { %384 = vperm.xlu0 %541, %v374_v20   ;;  %389 = vperm.xlu1 %542, %v375_v21   ;;  %p561_p4 = pnand %p560_p3, %p554_p0 }
  0x23   :  { %250 = vperm.xlu0 %541, %v224_v22   ;;  %394 = vperm.xlu1 %542, %v376_v23  }
  0x27   :  { %255 = vperm.xlu0 %541, %v225_v24   ;;  %399 = vperm.xlu1 %542, %v377_v25  }
  0x2b   :  { %260 = vperm.xlu0 %541, %v226_v26   ;;  %404 = vperm.xlu1 %542, %v378_v27  }
  0x2f   :  { %265 = vperm.xlu0 %541, %v227_v28   ;;  %409 = vperm.xlu1 %542, %v379_v29  }
  0x33   :  { %414 = vperm.xlu0 %541, %v380_v30   ;;  %419 = vperm.xlu1 %542, %v381_v31  }
  0x37   :  { %455 = vperm.xlu0 %541, %v452_v32  }
  0x86   :  { %v53_v34 = vpop.permute.xlu0 %52  ;;  %v63_v35 = vpop.permute.xlu1 %62 }
  0x8a   :  { %v58_v36 = vpop.permute.xlu0 %57  ;;  %v68_v37 = vpop.permute.xlu1 %67 }
  0x8e   :  { %v73_v41 = vpop.permute.xlu0 %72  ;;  %v78_v46 = vpop.permute.xlu1 %77 }
  0x92   :  { %v83_v53 = vpop.permute.xlu0 %82  ;;  %v88_v58 = vpop.permute.xlu1 %87 }
  0x96   :  { %v231_v9 = vpop.permute.xlu0 %230  ;;  %v236_v10 = vpop.permute.xlu1 %235 }
  0x9a   :  { %v241_v11 = vpop.permute.xlu0 %240  ;;  %v246_v12 = vpop.permute.xlu1 %245 }
  0x9e   :  { %v385_v13 = vpop.permute.xlu0 %384  ;;  %v390_v14 = vpop.permute.xlu1 %389 }
  0xa2   :  { %v251_v15 = vpop.permute.xlu0 %250  ;;  %v395_v16 = vpop.permute.xlu1 %394 }
  0xa6   :  { %v256_v17 = vpop.permute.xlu0 %255  ;;  %v400_v18 = vpop.permute.xlu1 %399 }
  0xaa   :  { %v261_v24 = vpop.permute.xlu0 %260  ;;  %v405_v30 = vpop.permute.xlu1 %404 }
  0xdf   :  { %v517_v38 = vpop.f32.mrb[0].mxu0 }
  0xe0   :  { %v178_v39 = vadd.f32 %v517_v38, %v63_v35  ;;  %v169_v40 = vpop.f32.mrb[1].mxu0 }
  0xe1   :  { %v170_v42 = vadd.f32 %v169_v40, %v53_v34  ;;  %v518_v43 = vpop.f32.mrb[2].mxu0 }
  0xe2   :  { %v181_v44 = vadd.f32 %v518_v43, %v68_v37  ;;  %v172_v45 = vpop.f32.mrb[3].mxu0  ;;  %v202_v48 = vmax.f32 %v178_v39, 0.0  ;;  %v266_v37 = vpop.permute.xlu0 %265 }
  0xe3   :  { %v173_v47 = vadd.f32 %v172_v45, %v58_v36  ;;  %v200_v50 = vmax.f32 %v170_v42, 0.0  ;;  %v410_v45 = vpop.permute.xlu1 %409 }
  0xe4   :  { %v203_v49 = vmax.f32 %v181_v44, 0.0 }
  0xe5   :  { %v201_v51 = vmax.f32 %v173_v47, 0.0 }
  0xe6   :  { %v217_v52 = vpack.c.bf16 %v203_v49, %v202_v48 }
  0xe7   :  { %v521_v54 = vpop.f32.mrb[4].mxu0  ;;  %v216_v55 = vpack.c.bf16 %v201_v51, %v200_v50 }
  0xe8   :  { %v194_v56 = vadd.f32 %v521_v54, %v83_v53  ;;  %v185_v57 = vpop.f32.mrb[5].mxu0 }
  0xe9   :  { %v186_v59 = vadd.f32 %v185_v57, %v73_v41  ;;  %v522_v60 = vpop.f32.mrb[6].mxu0  ;;  %523 = vmatprep.subr.bf16.mxu1 %v216_v55 }
  0xea   :  { %v197_v61 = vadd.f32 %v522_v60, %v88_v58  ;;  %v188_v62 = vpop.f32.mrb[7].mxu0  ;;  %524 = vmatpush3.bf16.msra.mxu1 %v216_v55  ;;  %v206_v0 = vmax.f32 %v194_v56, 0.0  ;;  %v415_v58 = vpop.permute.xlu0 %414 }
  0xeb   :  { %v189_v63 = vadd.f32 %v188_v62, %v78_v46  ;;  %525 = vmatprep.subr.bf16.mxu1 %v217_v52  ;;  %v204_v2 = vmax.f32 %v186_v59, 0.0 }
  0xec   :  { %v207_v1 = vmax.f32 %v197_v61, 0.0 }
  0xed   :  { %v205_v3 = vmax.f32 %v189_v63, 0.0  ;;  %v420_v63 = vpop.permute.xlu1 %419 }
  0xee   :  { %v219_v4 = vpack.c.bf16 %v207_v1, %v206_v0  ;;  %526 = vmatpush3.bf16.msra.mxu1 %v217_v52 }
  0xef   :  { %v218_v5 = vpack.c.bf16 %v205_v3, %v204_v2 }
  0xf1   :  { %527 = vmatprep.subr.bf16.mxu1 %v218_v5 }
  0xf2   :  { %528 = vmatpush3.bf16.msra.mxu1 %v218_v5 }
  0xf3   :  { %529 = vmatprep.subr.bf16.mxu1 %v219_v4 }
  0xf6   :  { %530 = vmatpush3.bf16.msra.mxu1 %v219_v4 }
  0xf9   :  { %532 = vmatmul.mubr.msk.bf16.vlgmr.msra.gmra.mrb[0].mxu1 %vm288_vm1, %v550_v6 }
  0xfa   :  { %535 = vmatprep.mubr.msk.bf16.mxu1 %vm288_vm1, %v551_v7  ;;  %v458_v7 = vlaneseq }
 0x101   :  { %536 = vmatmul.mubr.msk.bf16.gmra.mrb[4].mxu1 %vm288_vm1, %v552_v8 }
 0x1cc   :  { %v533_v19 = vpop.f32.mrb[0].mxu1 }
 0x1cd   :  { %v344_v20 = vadd.f32 %v533_v19, %v241_v11  ;;  %v335_v21 = vpop.f32.mrb[1].mxu1 }
 0x1ce   :  { %v336_v22 = vadd.f32 %v335_v21, %v231_v9  ;;  %v534_v23 = vpop.f32.mrb[2].mxu1 }
 0x1cf   :  { %v347_v25 = vadd.f32 %v534_v23, %v246_v12  ;;  %v338_v26 = vpop.f32.mrb[3].mxu1  ;;  %v368_v27 = vmax.f32 %v344_v20, 0.0 }
 0x1d0   :  { %v366_v28 = vmax.f32 %v336_v22, 0.0  ;;  %v339_v29 = vadd.f32 %v338_v26, %v236_v10  ;;  %v459_v10 = vshrl.u32 %v458_v7, 7 }
 0x1d1   :  { %v369_v32 = vmax.f32 %v347_v25, 0.0  ;;  %v424_v34 = vmul.f32 %v395_v16, %v368_v27 }
 0x1d2   :  { %v422_v31 = vmul.f32 %v385_v13, %v366_v28  ;;  %v367_v33 = vmax.f32 %v339_v29, 0.0  ;;  %v460_v13 = vsub.s32 0, %v459_v10 }
 0x1d3   :  { %v425_v41 = vmul.f32 %v400_v18, %v369_v32  ;;  %v434_v49 = vsel %vm430_vm2, %v424_v34, 0.0 }
 0x1d4   :  { %v423_v35 = vmul.f32 %v390_v14, %v367_v33  ;;  %v537_v36 = vpop.f32.mrb[4].mxu1  ;;  %v431_v40 = vsel %vm430_vm2, %v422_v31, 0.0 }
 0x1d5   :  { %v360_v38 = vadd.f32 %v537_v36, %v261_v24  ;;  %v351_v39 = vpop.f32.mrb[5].mxu1  ;;  %v436_v54 = vsel %vm430_vm2, %v425_v41, 0.0 }
 0x1d6   :  { %v432_v42 = vsel %vm430_vm2, %v423_v35, 0.0  ;;  %v352_v43 = vadd.f32 %v351_v39, %v251_v15  ;;  %v538_v44 = vpop.f32.mrb[6].mxu1  ;;  %v456_v15 = vpop.permute.xlu0 %455 }
 0x1d7   :  { %v433_v46 = vadd.f32 %v432_v42, %v431_v40  ;;  %v363_v47 = vadd.f32 %v538_v44, %v266_v37  ;;  %v354_v48 = vpop.f32.mrb[7].mxu1  ;;  %v372_v50 = vmax.f32 %v360_v38, 0.0 }
 0x1d8   :  { %v370_v51 = vmax.f32 %v352_v43, 0.0  ;;  %v355_v52 = vadd.f32 %v354_v48, %v256_v17  ;;  %v461_v17 = vrot.slane %v456_v15, %v460_v13 }
 0x1d9   :  { %v435_v53 = vadd.f32 %v434_v49, %v433_v46  ;;  %v373_v56 = vmax.f32 %v363_v47, 0.0  ;;  %v428_v60 = vmul.f32 %v415_v58, %v372_v50 }
 0x1da   :  { %v426_v55 = vmul.f32 %v405_v30, %v370_v51  ;;  %v371_v57 = vmax.f32 %v355_v52, 0.0 }
 0x1db   :  { %v437_v59 = vadd.f32 %v436_v54, %v435_v53  ;;  %v429_v1 = vmul.f32 %v420_v63, %v373_v56  ;;  %v442_v4 = vsel %vm430_vm2, %v428_v60, 0.0 }
 0x1dc   :  { %v438_v61 = vsel %vm430_vm2, %v426_v55, 0.0  ;;  %v427_v62 = vmul.f32 %v410_v45, %v371_v57 }
 0x1dd   :  { %v439_v0 = vadd.f32 %v438_v61, %v437_v59  ;;  %v444_v6 = vsel %vm430_vm2, %v429_v1, 0.0 }
 0x1de   :  { %v440_v2 = vsel %vm430_vm2, %v427_v62, 0.0 }
 0x1df   :  { %v441_v3 = vadd.f32 %v440_v2, %v439_v0 }
 0x1e1   :  { %v443_v5 = vadd.f32 %v442_v4, %v441_v3 }
 0x1e3   :  { %v445_v8 = vadd.f32 %v444_v6, %v443_v5 }
 0x1e5   :  { %v446_v9 = vrot.slane %v445_v8, 4 }
 0x1e7   :  { %v447_v11 = vadd.f32 %v446_v9, %v445_v8 }
 0x1e9   :  { %v448_v12 = vrot.slane %v447_v11, 2 }
 0x1eb   :  { %v449_v14 = vadd.f32 %v448_v12, %v447_v11 }
 0x1ed   :  { %v450_v16 = vrot.slane %v449_v14, 1 }
 0x1ef   :  { %v451_v18 = vadd.f32 %v450_v16, %v449_v14 }
 0x1f1   :  { %v462_v19 = vadd.f32 %v461_v17, %v451_v18 }
 0x1f3   :  { %464 = vst.msk [vmem:[#allocation3] sm:$0x1] %vm463_vm3, %v462_v19 }
 0x1f4   :  { %564 = shalt.err (!%p561_p4)
}
 0x1f5   :  { %s565_s18 = scalar_lea.hbm %s759_s7, 16 }
 0x1f6   :  { %p566_p5 = scmp.ne.s32.totalorder %s759_s7, %s565_s18  ;;  %p569_p6 = scmp.lt.u32.totalorder %s565_s18, %s759_s7 }
 0x1f8   :  { %p571_p7 = pnand %p569_p6, %p566_p5 }
 0x1fa   :  { %574 = shalt.err (!%p571_p7)
}
 0x1fb   :  { %474 = dma.vmem_to_hbm [thread:$0]  %s472_s13, 16, %s759_s7, [#allocation4]  }
 0x1fc   :  { %575 = dma.done.wait [#allocation4], 16  }
 0x1fd   :  { %576 = vsyncadd [#allocation4], 4294967280 }
 0x1fe   :  { %478 = vsyncpa [#allocation4], 1 }

</bundles_post_ra>
